<compile_context>
chip_gen: v7x
topology: tpu7x:2x2x1
jax: 0.10.0
libtpu: 0.0.40
codegen_flags: <defaults>
</compile_context>

<pallas_src>
import functools

import jax
import jax.numpy as jnp
from jax.experimental import pallas as pl
from jax.experimental.pallas import tpu as pltpu


_INV_SQRT2 = 0.7071067811865476


# ------------------------------ Pallas kernel -------------------------------

def _ffn_kernel(x_ref, w1_ref, b1_ref, w2_ref, b2_ref, o_ref, acc_ref,
                *, compute_dtype):
    """One (tile_m, D) row tile x one tile_h hidden chunk.

    grid = (M // tile_m, H // tile_h); axis 0 "parallel", axis 1 "arbitrary".
      x_ref  : (tile_m, D)   caller dtype (e.g. f32); cast in-register to compute_dtype
      w1_ref : (D, tile_h)   compute dtype, streamed along k
      b1_ref : (1, tile_h)   f32
      w2_ref : (tile_h, D)   compute dtype, streamed along k
      b2_ref : (1, D)        f32
      o_ref  : (tile_m, D)   out dtype, written only at the last k
      acc_ref: (tile_m, D)   f32 scratch accumulator, persists across k
    """
    k = pl.program_id(1)

    @pl.when(k == 0)
    def _():
        acc_ref[...] = jnp.zeros_like(acc_ref)

    # Cast the activation in-register (avoids a separate HBM astype pass).
    x = x_ref[...].astype(compute_dtype)

    # First matmul: narrow MXU inputs, f32 accumulation.
    h = jnp.dot(x, w1_ref[...], preferred_element_type=jnp.float32) + b1_ref[...]

    # Exact GELU (matches torch.nn.GELU(approximate='none')).
    # NOTE: lax.erf lowers to a VPU polynomial (not an EUP op).
    h = 0.5 * h * (1.0 + jax.lax.erf(h * _INV_SQRT2))

    # Second matmul: accumulate this hidden chunk's contribution in f32.
    acc_ref[...] += jnp.dot(h.astype(compute_dtype), w2_ref[...],
                            preferred_element_type=jnp.float32)

    @pl.when(k == pl.num_programs(1) - 1)
    def _():
        o_ref[...] = (acc_ref[...] + b2_ref[...]).astype(o_ref.dtype)


# ------------------------------ tiling helpers -------------------------------

def _pick_tile_m(M, want):
    """Largest row tile <= want that divides M (multiple of 8 sublanes)."""
    want = max(8, want)
    if M <= want:
        return M                      # single full-extent tile (always legal)
    start = min(want, M) - (min(want, M) % 8)
    for t in range(start, 7, -8):
        if M % t == 0:
            return t
    return want                       # no aligned divisor -> pad fallback


def _pick_tile_h(H, want):
    """Largest hidden chunk <= want that divides H (multiple of 128 lanes)."""
    if H <= want:
        return H
    start = min(want, H) - (min(want, H) % 128)
    for t in range(start, 127, -128):
        if H % t == 0:
            return t
    return H                          # fall back to untiled H (full extent)


def _tile_bytes(rows, cols, itemsize):
    """VMEM bytes of one (rows, cols) tile after (sublane, 128-lane) padding."""
    sub = (8 * 4) // itemsize         # f32 -> 8 rows, bf16 -> 16 rows per vreg
    r = (rows + sub - 1) // sub * sub
    c = (cols + 127) // 128 * 128
    return r * c * itemsize


def _vmem_budget(tile_m, tile_h, D, H, x_itemsize, out_itemsize, w_itemsize):
    b = 0
    b += 2 * _tile_bytes(tile_m, D, x_itemsize)      # x tile (double-buffered)
    b += 2 * _tile_bytes(D, tile_h, w_itemsize)      # w1 block
    b += 2 * _tile_bytes(1, tile_h, 4)               # b1 block
    b += 2 * _tile_bytes(tile_h, D, w_itemsize)      # w2 block
    b += 2 * _tile_bytes(1, D, 4)                    # b2 block
    b += 2 * _tile_bytes(tile_m, D, out_itemsize)    # out tile
    b += _tile_bytes(tile_m, D, 4)                   # f32 accumulator scratch
    b += _tile_bytes(tile_m, tile_h, 4)              # h (f32) live
    b += _tile_bytes(tile_m, tile_h, 2)              # h (compute dtype) live
    # ~50% headroom for compiler temporaries; floor 8 MiB, cap 64 MiB (v7x physical).
    return min(max(int(1.5 * b) + (2 << 20), 8 << 20), 64 << 20)


# --------------------------------- wrapper ----------------------------------

def feedforward(x, params, *, tile_m=256, tile_h=512,
                compute_dtype=jnp.bfloat16, out_dtype=None,
                vmem_limit_bytes=None):
    """FeedForward forward pass: x @ w1 + b1 -> GELU -> @ w2 + b2 (dropout = id)."""
    w1, b1, w2, b2 = params["w1"], params["b1"], params["w2"], params["b2"]
    out_dtype = x.dtype if out_dtype is None else out_dtype
    *lead, D = x.shape
    H = w1.shape[1]

    x2 = x.reshape(-1, D)
    M = x2.shape[0]

    tile_m = _pick_tile_m(M, tile_m)
    tile_h = _pick_tile_h(H, tile_h)

    m_pad = -(-M // tile_m) * tile_m
    if m_pad != M:
        # Only hit when no sublane-aligned divisor of M exists.
        x2 = jnp.pad(x2, ((0, m_pad - M), (0, 0)))

    # Cast weights once in the wrapper (reused across all grid steps / calls);
    # biases stay f32 (they add onto the f32 accumulator).
    w1c = w1.astype(compute_dtype)
    w2c = w2.astype(compute_dtype)
    b1r = b1.reshape(1, H).astype(jnp.float32)
    b2r = b2.reshape(1, D).astype(jnp.float32)

    grid = (m_pad // tile_m, H // tile_h)

    if vmem_limit_bytes is None:
        vmem_limit_bytes = _vmem_budget(
            tile_m, tile_h, D, H,
            x2.dtype.itemsize,
            jnp.dtype(out_dtype).itemsize,
            jnp.dtype(compute_dtype).itemsize)

    kernel = functools.partial(_ffn_kernel, compute_dtype=compute_dtype)

    out = pl.pallas_call(
        kernel,
        out_shape=jax.ShapeDtypeStruct((m_pad, D), out_dtype),
        grid=grid,
        in_specs=[
            pl.BlockSpec((tile_m, D), lambda i, k: (i, 0)),   # x row tile
            pl.BlockSpec((D, tile_h), lambda i, k: (0, k)),   # w1 hidden chunk
            pl.BlockSpec((1, tile_h), lambda i, k: (0, k)),   # b1 hidden chunk
            pl.BlockSpec((tile_h, D), lambda i, k: (k, 0)),   # w2 hidden chunk
            pl.BlockSpec((1, D),      lambda i, k: (0, 0)),   # b2
        ],
        out_specs=pl.BlockSpec((tile_m, D), lambda i, k: (i, 0)),
        scratch_shapes=[pltpu.VMEM((tile_m, D), jnp.float32)],
        compiler_params=pltpu.CompilerParams(
            dimension_semantics=("parallel", "arbitrary"),
            vmem_limit_bytes=vmem_limit_bytes),
    )(x2, w1c, b1r, w2c, b2r)

    if m_pad != M:
        out = out[:M]
    return out.reshape(*lead, D)


# ---------------------------- pure-JAX references ----------------------------

def _ref_ffn_f32(x, params):
    """Full-f32 reference (module semantics)."""
    h = jnp.dot(x, params["w1"],
                precision=jax.lax.Precision.HIGHEST) + params["b1"]
    h = 0.5 * h * (1.0 + jax.lax.erf(h * _INV_SQRT2))
    return jnp.dot(h, params["w2"],
                   precision=jax.lax.Precision.HIGHEST) + params["b2"]


def _ref_ffn_matched(x, params, compute_dtype=jnp.bfloat16):
    """Reference using the same bf16-in / f32-accumulate recipe as the kernel."""
    xc = x.astype(compute_dtype)
    w1 = params["w1"].astype(compute_dtype)
    w2 = params["w2"].astype(compute_dtype)
    h = jnp.dot(xc, w1, preferred_element_type=jnp.float32) \
        + params["b1"].astype(jnp.float32)
    h = 0.5 * h * (1.0 + jax.lax.erf(h * _INV_SQRT2))
    y = jnp.dot(h.astype(compute_dtype), w2, preferred_element_type=jnp.float32) \
        + params["b2"].astype(jnp.float32)
    return y.astype(x.dtype)


# ------------------------------------ main -----------------------------------

if __name__ == "__main__":
    # Small but MXU-friendly shapes: D/H multiples of 256 keep v6e/v7x 256x256
    # MXUs full and all loads/stores lane-dense.  M = B*N = 128 rows.
    B, N, DIM, HIDDEN = 2, 64, 256, 512

    key = jax.random.PRNGKey(0)
    kx, kw1, kb1, kw2, kb2 = jax.random.split(key, 5)

    x = jax.random.normal(kx, (B, N, DIM), jnp.float32)

    lim1 = 1.0 / (DIM ** 0.5)     # nn.Linear-style init bounds
    lim2 = 1.0 / (HIDDEN ** 0.5)
    params = dict(
        w1=jax.random.uniform(kw1, (DIM, HIDDEN), jnp.float32, -lim1, lim1),
        b1=jax.random.uniform(kb1, (HIDDEN,), jnp.float32, -lim1, lim1),
        w2=jax.random.uniform(kw2, (HIDDEN, DIM), jnp.float32, -lim2, lim2),
        b2=jax.random.uniform(kb2, (DIM,), jnp.float32, -lim2, lim2),
    )

    # Small tiles here purely to exercise the full 2x2 grid (row-parallel x
    # H-accumulate init/finalize path); production defaults are tile_m=256,
    # tile_h=512 (largest that fit the VMEM budget).
    fwd = jax.jit(functools.partial(feedforward, tile_m=64, tile_h=256))
    out = jax.block_until_ready(fwd(x, params))

    assert out.shape == (B, N, DIM)
    assert bool(jnp.all(jnp.isfinite(out)))

    # (1) Exact-recipe check (same bf16 cast + f32 accumulate): tight tolerance.
    ref_m = _ref_ffn_matched(x, params)
    assert bool(jnp.allclose(out, ref_m, rtol=2e-3, atol=2e-3)), (
        f"matched-ref max abs diff {float(jnp.max(jnp.abs(out - ref_m)))}")

    # (2) Sanity check against the full-f32 module semantics (bf16 error bound).
    ref_32 = _ref_ffn_f32(x, params)
    assert bool(jnp.allclose(out, ref_32, rtol=5e-2, atol=5e-2)), (
        f"f32-ref max abs diff {float(jnp.max(jnp.abs(out - ref_32)))}")

    print("KERNEL_OK")
</pallas_src>

<mosaic_0001>
module attributes {stable_mosaic.version = 11 : i64} {
  func.func @_ffn_kernel(%arg0: i32, %arg1: i32, %arg2: memref<64x256xf32, #tpu.memory_space<vmem>>, %arg3: memref<256x256xbf16, #tpu.memory_space<vmem>>, %arg4: memref<1x256xf32, #tpu.memory_space<vmem>>, %arg5: memref<256x256xbf16, #tpu.memory_space<vmem>>, %arg6: memref<1x256xf32, #tpu.memory_space<vmem>>, %arg7: memref<64x256xf32, #tpu.memory_space<vmem>>, %arg8: memref<64x256xf32, #tpu.memory_space<vmem>>) attributes {dimension_semantics = [#tpu.dimension_semantics<parallel>, #tpu.dimension_semantics<arbitrary>], iteration_bounds = array<i64: 2, 2>, scalar_prefetch = 0 : i64, scratch_operands = 1 : i64, tpu.core_type = #tpu.core_type<tc>, window_params = [{transform_indices = @transform_0, window_bounds = array<i64: 64, 256>}, {transform_indices = @transform_1, window_bounds = array<i64: 256, 256>}, {transform_indices = @transform_2, window_bounds = array<i64: 1, 256>}, {transform_indices = @transform_3, window_bounds = array<i64: 256, 256>}, {pipeline_mode = #tpu.pipeline_mode<synchronous>, transform_indices = @transform_4, window_bounds = array<i64: 1, 256>}, {transform_indices = @transform_5, window_bounds = array<i64: 64, 256>}]} {
    %c0_i32 = arith.constant 0 : i32
    %0 = arith.cmpi eq, %arg1, %c0_i32 : i32
    %1 = arith.extui %0 : i1 to i32
    %c0_i32_0 = arith.constant 0 : i32
    %2 = arith.cmpi ne, %1, %c0_i32_0 : i32
    scf.if %2 {
      %cst_17 = arith.constant 0.000000e+00 : f32
      %27 = vector.broadcast %cst_17 : f32 to vector<64x256xf32>
      %c0_18 = arith.constant 0 : index
      %c0_19 = arith.constant 0 : index
      %28 = vector.load %arg8[%c0_18, %c0_19] : memref<64x256xf32, #tpu.memory_space<vmem>>, vector<64x256xf32>
      tpu.vector_store %arg8[%c0_18, %c0_19], %27 {strides = array<i32>} : memref<64x256xf32, #tpu.memory_space<vmem>>, vector<64x256xf32>,
    } else {
    }
    %c0 = arith.constant 0 : index
    %c0_1 = arith.constant 0 : index
    %3 = vector.load %arg2[%c0, %c0_1] : memref<64x256xf32, #tpu.memory_space<vmem>>, vector<64x256xf32>
    %4 = arith.truncf %3 : vector<64x256xf32> to vector<64x256xbf16>
    %c0_2 = arith.constant 0 : index
    %c0_3 = arith.constant 0 : index
    %5 = vector.load %arg3[%c0_2, %c0_3] : memref<256x256xbf16, #tpu.memory_space<vmem>>, vector<256x256xbf16>
    %cst = arith.constant dense<0.000000e+00> : vector<64x256xf32>
    %6 = tpu.matmul %4, %5, %cst {dimension_numbers = #tpu.dot_dimension_numbers<[1], [0], [0], [1], [0, 0, 1, 1], [], []>} : vector<64x256xbf16>, vector<256x256xbf16>, vector<64x256xf32> -> vector<64x256xf32>
    %c0_4 = arith.constant 0 : index
    %c0_5 = arith.constant 0 : index
    %7 = vector.load %arg4[%c0_4, %c0_5] : memref<1x256xf32, #tpu.memory_space<vmem>>, vector<1x256xf32>
    %8 = vector.broadcast %7 : vector<1x256xf32> to vector<64x256xf32>
    %9 = arith.addf %6, %8 : vector<64x256xf32>
    %cst_6 = arith.constant 5.000000e-01 : f32
    %10 = vector.broadcast %cst_6 : f32 to vector<64x256xf32>
    %11 = arith.mulf %10, %9 : vector<64x256xf32>
    %cst_7 = arith.constant 0.707106769 : f32
    %12 = vector.broadcast %cst_7 : f32 to vector<64x256xf32>
    %13 = arith.mulf %9, %12 : vector<64x256xf32>
    %14 = math.erf %13 : vector<64x256xf32>
    %cst_8 = arith.constant 1.000000e+00 : f32
    %15 = vector.broadcast %cst_8 : f32 to vector<64x256xf32>
    %16 = arith.addf %15, %14 : vector<64x256xf32>
    %17 = arith.mulf %11, %16 : vector<64x256xf32>
    %c0_9 = arith.constant 0 : index
    %c0_10 = arith.constant 0 : index
    %18 = vector.load %arg8[%c0_9, %c0_10] : memref<64x256xf32, #tpu.memory_space<vmem>>, vector<64x256xf32>
    %19 = arith.truncf %17 : vector<64x256xf32> to vector<64x256xbf16>
    %c0_11 = arith.constant 0 : index
    %c0_12 = arith.constant 0 : index
    %20 = vector.load %arg5[%c0_11, %c0_12] : memref<256x256xbf16, #tpu.memory_space<vmem>>, vector<256x256xbf16>
    %cst_13 = arith.constant dense<0.000000e+00> : vector<64x256xf32>
    %21 = tpu.matmul %19, %20, %cst_13 {dimension_numbers = #tpu.dot_dimension_numbers<[1], [0], [0], [1], [0, 0, 1, 1], [], []>} : vector<64x256xbf16>, vector<256x256xbf16>, vector<64x256xf32> -> vector<64x256xf32>
    %22 = arith.addf %18, %21 : vector<64x256xf32>
    %c0_14 = arith.constant 0 : index
    %c0_15 = arith.constant 0 : index
    %23 = vector.load %arg8[%c0_14, %c0_15] : memref<64x256xf32, #tpu.memory_space<vmem>>, vector<64x256xf32>
    tpu.vector_store %arg8[%c0_14, %c0_15], %22 {strides = array<i32>} : memref<64x256xf32, #tpu.memory_space<vmem>>, vector<64x256xf32>,
    %c1_i32 = arith.constant 1 : i32
    %24 = arith.cmpi eq, %arg1, %c1_i32 : i32
    %25 = arith.extui %24 : i1 to i32
    %c0_i32_16 = arith.constant 0 : i32
    %26 = arith.cmpi ne, %25, %c0_i32_16 : i32
    scf.if %26 {
      %c0_17 = arith.constant 0 : index
      %c0_18 = arith.constant 0 : index
      %27 = vector.load %arg8[%c0_17, %c0_18] : memref<64x256xf32, #tpu.memory_space<vmem>>, vector<64x256xf32>
      %c0_19 = arith.constant 0 : index
      %c0_20 = arith.constant 0 : index
      %28 = vector.load %arg6[%c0_19, %c0_20] : memref<1x256xf32, #tpu.memory_space<vmem>>, vector<1x256xf32>
      %29 = vector.broadcast %28 : vector<1x256xf32> to vector<64x256xf32>
      %30 = arith.addf %27, %29 : vector<64x256xf32>
      %c0_21 = arith.constant 0 : index
      %c0_22 = arith.constant 0 : index
      %31 = vector.load %arg7[%c0_21, %c0_22] : memref<64x256xf32, #tpu.memory_space<vmem>>, vector<64x256xf32>
      tpu.vector_store %arg7[%c0_21, %c0_22], %30 {strides = array<i32>} : memref<64x256xf32, #tpu.memory_space<vmem>>, vector<64x256xf32>,
    } else {
    }
    return
  }
  func.func @transform_0(%arg0: i32, %arg1: i32) -> (i32, i32) {
    %c0_i32 = arith.constant 0 : i32
    %c0_i32_0 = arith.constant 0 : i32
    return %arg0, %c0_i32 : i32, i32
  }
  func.func @transform_1(%arg0: i32, %arg1: i32) -> (i32, i32) {
    %c0_i32 = arith.constant 0 : i32
    %c0_i32_0 = arith.constant 0 : i32
    return %c0_i32, %arg1 : i32, i32
  }
  func.func @transform_2(%arg0: i32, %arg1: i32) -> (i32, i32) {
    %c0_i32 = arith.constant 0 : i32
    %c0_i32_0 = arith.constant 0 : i32
    return %c0_i32, %arg1 : i32, i32
  }
  func.func @transform_3(%arg0: i32, %arg1: i32) -> (i32, i32) {
    %c0_i32 = arith.constant 0 : i32
    %c0_i32_0 = arith.constant 0 : i32
    return %arg1, %c0_i32 : i32, i32
  }
  func.func @transform_4(%arg0: i32, %arg1: i32) -> (i32, i32) {
    %c0_i32 = arith.constant 0 : i32
    %c0_i32_0 = arith.constant 0 : i32
    %c0_i32_1 = arith.constant 0 : i32
    return %c0_i32, %c0_i32_0 : i32, i32
  }
  func.func @transform_5(%arg0: i32, %arg1: i32) -> (i32, i32) {
    %c0_i32 = arith.constant 0 : i32
    %c0_i32_0 = arith.constant 0 : i32
    return %arg0, %c0_i32 : i32, i32
  }
}

</mosaic_0001>

<bundles_post_ra>
// kernel: feedforward.1
= control target key start
LH: loop header
LB: loop body
LE: loop exit
PB: predicated region body
PF: predicated region fallthrough
CT: control target
= control target key end

     0   :  { %s2246_s0 = inlined_call_operand.vmem [shape: f32[128,256], index: 0, kind: input, shape index: {}]   ;;  %s2247_s1 = inlined_call_operand.vmem [shape: bf16[256,512], index: 1, kind: input, shape index: {}]   ;;  %s2248_s2 = inlined_call_operand.vmem [shape: f32[1,512], index: 2, kind: input, shape index: {}]   ;;  %s2249_s3 = inlined_call_operand.vmem [shape: bf16[512,256], index: 3, kind: input, shape index: {}]   ;;  %s2250_s4 = inlined_call_operand.vmem [shape: f32[1,256], index: 4, kind: input, shape index: {}]   ;;  %s2251_s5 = inlined_call_operand.hbm [shape: f32[128,256], index: 5, kind: output, shape index: {}]  }
   0x1   :  { %2258 = sst [smem:[#allocation13_spill]] %s2247_s1 }
   0x2   :  { %10 = vsyncpa [#allocation5], 0 }
   0x3   :  { %12 = vsyncpa [#allocation5 + $0x1], 0  ;;  %s1836_s18 = smov 0   ;;  %s1838_s19 = smov 0  }
   0x4   :  { %s1840_s20 = smov 0   ;;  %s1842_s21 = smov 0  }
   0x5   :  { %s1844_s22 = smov 0   ;;  %s1846_s23 = smov 0  }
   0x6   :  { %s1848_s24 = smov 0   ;;  %s1850_s25 = smov 0  }
   0x7   :  { %s1852_s26 = smov 0   ;;  %s1854_s27 = smov 0  }
   0x8 LB: > { %2259 = sst [smem:[#allocation7_spill]] %s1780_s22  ;;  %s1378_s28 = sadd.s32 4294967295, %s1800_s27   ;;  %s1800_s27 = sphi %s1854_s27, %s18_s27   ;;  %s1796_s26 = sphi %s1852_s26, %s2275_s26   ;;  %s1792_s25 = sphi %s1850_s25, %s2274_s25   ;;  %s1788_s24 = sphi %s1848_s24, %s2273_s24   ;;  %s1784_s23 = sphi %s1846_s23, %s2272_s23   ;;  %s1780_s22 = sphi %s1844_s22, %s2271_s22   ;;  %s1776_s21 = sphi %s1842_s21, %s2270_s21   ;;  %s1772_s20 = sphi %s1840_s20, %s2278_s20   ;;  %s1768_s19 = sphi %s1838_s19, %s2277_s19   ;;  %s1764_s18 = sphi %s1836_s18, %s2276_s18  }
   0x9   : > { %2260 = sst [smem:[#allocation8_spill]] %s1792_s25  ;;  %s1379_s29 = sadd.s32 4294967294, %s1800_s27  }
   0xa   : > { %2261 = sst [smem:[#allocation9_spill]] %s1796_s26  ;;  %s27_s30 = sadd.s32 1, %s1792_s25 }
   0xb   : > { %s30_s6 = sadd.s32 1, %s1796_s26  ;;  %p28_p0 = scmp.ge.s32.totalorder %s27_s30, 2 }
   0xc   : > { %s63_s7 = sadd.s32 1, %s1780_s22  ;;  %p70_p1 = scmp.ne.s32.totalorder %s1780_s22, %s1776_s21 }
   0xd   : > { %p71_p2 = scmp.eq.s32.totalorder %s1800_s27, 0  ;;  %s2280_s30 = smov (%p28_p0, %s27_s30), 0 }
   0xe   : > { %2262 = sst [smem:[#allocation10_spill]] %s2280_s30  ;;  %s2282_s6 = smov (!%p28_p0, %s30_s6), %s1796_s26 }
   0xf   : > { %s60_s8 = ssub.s32 %s1792_s25, %s2280_s30  ;;  %p1899_p3 = por %p71_p2, %p70_p1 }
  0x10   : > { %p32_p4 = scmp.ge.s32.totalorder %s2282_s6, 2  ;;  %p61_p5 = scmp.eq.s32.totalorder %s60_s8, 0 }
  0x11   : > { %s162_s10 = sadd.s32 1, %s1772_s20  ;;  %p172_p6 = scmp.ne.s32.totalorder %s1772_s20, %s1768_s19 }
  0x12   : > { %s2284_s6 = smov (%p32_p4, %s2282_s6), 0  ;;  %p173_p7 = scmp.eq.s32.totalorder %s1378_s28, 3 }
  0x13   : > { %2264 = sst [smem:[#allocation11_spill]] %s2284_s6  ;;  %s159_s12 = ssub.s32 %s1796_s26, %s2284_s6 }
  0x14   : > { %s1909_s11 = scalar_select %p61_p5, %s1780_s22, %s63_s7  }
  0x15   : > { %p160_p8 = scmp.eq.s32.totalorder %s159_s12, 0  ;;  %p178_p9 = scmp.ne.s32.totalorder %s1768_s19, %s1764_s18 }
  0x16   : > { %2265 = sst [smem:[#allocation12_spill]] %s1909_s11  ;;  %p1915_p10 = por %p173_p7, %p172_p6 }
  0x17   : > { %p179_p11 = scmp.eq.s32.totalorder %s1379_s29, 3  ;;  %p1381_p13 = scmp.ge.s32.totalorder %s1800_s27, 4 }
  0x18   : > { %s1920_s14 = scalar_select %p160_p8, %s1772_s20, %s162_s10  }
  0x19   : > { %p1922_p12 = por %p179_p11, %p178_p9  ;;  %198 = sbr.rel (%p1381_p13) target bundleno = 58 (0x3a), region = 20 }
  0x20   : > { %211 = sbr.rel (!%p1899_p3) target bundleno = 58 (0x3a), region = 28  ;;  %s213_s16 = sand.u32 (%p1899_p3), 1, %s1780_s22  }
  0x21   : > { %s1467_s17 = sshll.u32 (%p1899_p3), %s1792_s25, 3  ;;  %s1382_s28 = sshll.u32 (%p1899_p3), %s213_s16, 8 }
  0x22   : > { %s2268_s1 = sld [smem:[#allocation13_spill]] (%p1899_p3)  ;;  %s1939_s9 = scalar_lea.vmem (%p1899_p3), [#allocation3], %s1382_s28 }
  0x28   : > { %s1934_s29 = scalar_lea.vmem %s2268_s1, %s1467_s17 }
  0x29   : > { %v308_v0 = vld [vmem:[%s1934_s29] sm:$0xff]  ;;  %v310_v1 = vld [vmem:[%s1934_s29 + $0x10] sm:$0xff] }
  0x2a   : > { %v312_v2 = vld [vmem:[%s1934_s29 + $0x20] sm:$0xff]  ;;  %309 = vst [vmem:[%s1939_s9] sm:$0xff] %v308_v0  ;;  %311 = vst [vmem:[%s1939_s9 + $0x8] sm:$0xff] %v310_v1  ;;  %v314_v3 = vld [vmem:[%s1934_s29 + $0x30] sm:$0xff] }
  0x2b   : > { %313 = vst [vmem:[%s1939_s9 + $0x10] sm:$0xff] %v312_v2  ;;  %v316_v4 = vld [vmem:[%s1934_s29 + $0x40] sm:$0xff]  ;;  %v318_v5 = vld [vmem:[%s1934_s29 + $0x50] sm:$0xff]  ;;  %315 = vst [vmem:[%s1939_s9 + $0x18] sm:$0xff] %v314_v3 }
  0x2c   : > { %317 = vst [vmem:[%s1939_s9 + $0x20] sm:$0xff] %v316_v4  ;;  %319 = vst [vmem:[%s1939_s9 + $0x28] sm:$0xff] %v318_v5  ;;  %v320_v6 = vld [vmem:[%s1934_s29 + $0x60] sm:$0xff]  ;;  %v322_v7 = vld [vmem:[%s1934_s29 + $0x70] sm:$0xff] }
  0x2d   : > { %v324_v8 = vld [vmem:[%s1934_s29 + $0x80] sm:$0xff]  ;;  %321 = vst [vmem:[%s1939_s9 + $0x30] sm:$0xff] %v320_v6  ;;  %323 = vst [vmem:[%s1939_s9 + $0x38] sm:$0xff] %v322_v7  ;;  %v326_v9 = vld [vmem:[%s1934_s29 + $0x90] sm:$0xff] }
  0x2e   : > { %325 = vst [vmem:[%s1939_s9 + $0x40] sm:$0xff] %v324_v8  ;;  %v328_v10 = vld [vmem:[%s1934_s29 + $0xa0] sm:$0xff]  ;;  %v330_v11 = vld [vmem:[%s1934_s29 + $0xb0] sm:$0xff]  ;;  %327 = vst [vmem:[%s1939_s9 + $0x48] sm:$0xff] %v326_v9 }
  0x2f   : > { %329 = vst [vmem:[%s1939_s9 + $0x50] sm:$0xff] %v328_v10  ;;  %331 = vst [vmem:[%s1939_s9 + $0x58] sm:$0xff] %v330_v11  ;;  %v332_v12 = vld [vmem:[%s1934_s29 + $0xc0] sm:$0xff]  ;;  %v334_v13 = vld [vmem:[%s1934_s29 + $0xd0] sm:$0xff] }
  0x30   : > { %v336_v14 = vld [vmem:[%s1934_s29 + $0xe0] sm:$0xff]  ;;  %333 = vst [vmem:[%s1939_s9 + $0x60] sm:$0xff] %v332_v12  ;;  %335 = vst [vmem:[%s1939_s9 + $0x68] sm:$0xff] %v334_v13  ;;  %v338_v15 = vld [vmem:[%s1934_s29 + $0xf0] sm:$0xff] }
  0x31   : > { %337 = vst [vmem:[%s1939_s9 + $0x70] sm:$0xff] %v336_v14  ;;  %v340_v16 = vld [vmem:[%s1934_s29 + $0x100] sm:$0xff]  ;;  %v342_v17 = vld [vmem:[%s1934_s29 + $0x110] sm:$0xff]  ;;  %339 = vst [vmem:[%s1939_s9 + $0x78] sm:$0xff] %v338_v15 }
  0x32   : > { %341 = vst [vmem:[%s1939_s9 + $0x80] sm:$0xff] %v340_v16  ;;  %343 = vst [vmem:[%s1939_s9 + $0x88] sm:$0xff] %v342_v17  ;;  %v344_v18 = vld [vmem:[%s1934_s29 + $0x120] sm:$0xff]  ;;  %v346_v19 = vld [vmem:[%s1934_s29 + $0x130] sm:$0xff] }
  0x33   : > { %v348_v20 = vld [vmem:[%s1934_s29 + $0x140] sm:$0xff]  ;;  %345 = vst [vmem:[%s1939_s9 + $0x90] sm:$0xff] %v344_v18  ;;  %347 = vst [vmem:[%s1939_s9 + $0x98] sm:$0xff] %v346_v19  ;;  %v350_v21 = vld [vmem:[%s1934_s29 + $0x150] sm:$0xff] }
  0x34   : > { %349 = vst [vmem:[%s1939_s9 + $0xa0] sm:$0xff] %v348_v20  ;;  %v352_v22 = vld [vmem:[%s1934_s29 + $0x160] sm:$0xff]  ;;  %v354_v23 = vld [vmem:[%s1934_s29 + $0x170] sm:$0xff]  ;;  %351 = vst [vmem:[%s1939_s9 + $0xa8] sm:$0xff] %v350_v21 }
  0x35   : > { %353 = vst [vmem:[%s1939_s9 + $0xb0] sm:$0xff] %v352_v22  ;;  %355 = vst [vmem:[%s1939_s9 + $0xb8] sm:$0xff] %v354_v23  ;;  %v356_v24 = vld [vmem:[%s1934_s29 + $0x180] sm:$0xff]  ;;  %v358_v25 = vld [vmem:[%s1934_s29 + $0x190] sm:$0xff] }
  0x36   : > { %v360_v26 = vld [vmem:[%s1934_s29 + $0x1a0] sm:$0xff]  ;;  %357 = vst [vmem:[%s1939_s9 + $0xc0] sm:$0xff] %v356_v24  ;;  %359 = vst [vmem:[%s1939_s9 + $0xc8] sm:$0xff] %v358_v25  ;;  %v362_v27 = vld [vmem:[%s1934_s29 + $0x1b0] sm:$0xff] }
  0x37   : > { %361 = vst [vmem:[%s1939_s9 + $0xd0] sm:$0xff] %v360_v26  ;;  %v364_v28 = vld [vmem:[%s1934_s29 + $0x1c0] sm:$0xff]  ;;  %v366_v29 = vld [vmem:[%s1934_s29 + $0x1d0] sm:$0xff]  ;;  %363 = vst [vmem:[%s1939_s9 + $0xd8] sm:$0xff] %v362_v27 }
  0x38   : > { %365 = vst [vmem:[%s1939_s9 + $0xe0] sm:$0xff] %v364_v28  ;;  %367 = vst [vmem:[%s1939_s9 + $0xe8] sm:$0xff] %v366_v29  ;;  %v368_v30 = vld [vmem:[%s1934_s29 + $0x1e0] sm:$0xff]  ;;  %v370_v31 = vld [vmem:[%s1934_s29 + $0x1f0] sm:$0xff] }
  0x39   : > { %369 = vst [vmem:[%s1939_s9 + $0xf0] sm:$0xff] %v368_v30  ;;  %371 = vst [vmem:[%s1939_s9 + $0xf8] sm:$0xff] %v370_v31 }
  0x3a PF: > { %p1385_p0 = scmp.ge.s32.totalorder %s1800_s27, 1  ;;  %p394_p1 = scmp.lt.s32.totalorder %s1800_s27, 5 }
  0x3c   : > { %p395_p2 = pnand %p1385_p0, %p394_p1 }
  0x3d   : > { %s401_s10 = sand.u32 (!%p395_p2), 1, %s1776_s21   ;;  %s2253_s12 = sand.u32 (!%p395_p2), 1, %s1768_s19  }
  0x3e   : > { %398 = sbr.rel (%p395_p2) target bundleno = 660 (0x294), region = 74  ;;  %s1386_s16 = sshll.u32 (!%p395_p2), %s401_s10, 8 }
  0x3f   : > { %s1387_s17 = sshll.u32 (!%p395_p2), %s2253_s12, 7  ;;  %s1388_s28 = sshll.u32 (!%p395_p2), %s1788_s24, 3 }
  0x40   : > { %s1391_s7 = sshll.u32 (!%p395_p2), %s1784_s23, 1  ;;  %p445_p3 = scmp.lt.s32.totalorder (!%p395_p2), %s1388_s28, 15 }
  0x41   : > { %p453_p4 = scmp.lt.s32.totalorder (!%p395_p2), %s1391_s7, 3  ;;  %s1392_s8 = sshll.u32 (!%p395_p2), %s1784_s23, 5 }
  0x42   : > { %p458_p5 = scmp.lt.s32.totalorder (!%p395_p2), %s1392_s8, 63  ;;  %s2027_s22 = scalar_lea.vmem (!%p395_p2), [#allocation3], %s1386_s16 }
  0x43   : > { %p1395_p6 = scmp.ne.s32.totalorder (!%p395_p2), %s1784_s23, 0 }
  0x45   : > { %s2286_s28 = smov (!%p445_p3, %s1388_s28), 15  ;;  %s2288_s7 = smov (!%p453_p4, %s1391_s7), 3 }
  0x46   : > { %s1468_s29 = sshll.u32 %s2286_s28, 4  ;;  %s455_s12 = scalar_lea.vmem %s2248_s2, %s2288_s7  ;;  %v1802_v32 = vmov (!%p1395_p6), 0.0  }
  0x47   : > { %s2016_s6 = scalar_lea.vmem %s2246_s0, %s1468_s29  ;;  %s2290_s8 = smov (!%p458_p5, %s1392_s8), 63  ;;  %469 = vst [vmem:[#allocation2] sm:$0xff] (!%p1395_p6), %v1802_v32  ;;  %470 = vst [vmem:[#allocation2 + $0x8] sm:$0xff] (!%p1395_p6), %v1802_v32 }
  0x48   : > { %s1469_s30 = sshll.u32 %s2290_s8, 3  ;;  %s2029_s28 = scalar_lea.vmem [#allocation4], %s1387_s17  ;;  %471 = vst [vmem:[#allocation2 + $0x10] sm:$0xff] (!%p1395_p6), %v1802_v32  ;;  %472 = vst [vmem:[#allocation2 + $0x18] sm:$0xff] (!%p1395_p6), %v1802_v32 }
  0x49   : > { %s2025_s11 = scalar_lea.vmem %s2249_s3, %s1469_s30  ;;  %468 = sbr.rel (%p1395_p6) target bundleno = 80 (0x50), region = 82  ;;  %473 = vst [vmem:[#allocation2 + $0x20] sm:$0xff] (!%p1395_p6), %v1802_v32  ;;  %474 = vst [vmem:[#allocation2 + $0x28] sm:$0xff] (!%p1395_p6), %v1802_v32 }
  0x4a   : > { %475 = vst [vmem:[#allocation2 + $0x30] sm:$0xff] (!%p1395_p6), %v1802_v32  ;;  %476 = vst [vmem:[#allocation2 + $0x38] sm:$0xff] (!%p1395_p6), %v1802_v32 }
  0x4b   : > { %477 = vst [vmem:[#allocation2 + $0x40] sm:$0xff] (!%p1395_p6), %v1802_v32  ;;  %478 = vst [vmem:[#allocation2 + $0x48] sm:$0xff] (!%p1395_p6), %v1802_v32 }
  0x4c   : > { %479 = vst [vmem:[#allocation2 + $0x50] sm:$0xff] (!%p1395_p6), %v1802_v32  ;;  %480 = vst [vmem:[#allocation2 + $0x58] sm:$0xff] (!%p1395_p6), %v1802_v32 }
  0x4d   : > { %481 = vst [vmem:[#allocation2 + $0x60] sm:$0xff] (!%p1395_p6), %v1802_v32  ;;  %482 = vst [vmem:[#allocation2 + $0x68] sm:$0xff] (!%p1395_p6), %v1802_v32 }
  0x4e   : > { %483 = vst [vmem:[#allocation2 + $0x70] sm:$0xff] (!%p1395_p6), %v1802_v32  ;;  %484 = vst [vmem:[#allocation2 + $0x78] sm:$0xff] (!%p1395_p6), %v1802_v32 }
  0x50 PF: > { %v1562_v33 = vld [vmem:[%s2027_s22 + $0x4] ss:$8 sps:$4 sm:$0xff]   ;;  %v1564_v34 = vld [vmem:[%s2027_s22] ss:$8 sps:$4 sm:$0xff]   ;;  %v1565_v35 = vld [vmem:[%s2027_s22 + $0x14] ss:$8 sps:$4 sm:$0xff]  }
  0x51   : > { %713 = vmatprep.subr.bf16.mxu0 %v1562_v33  ;;  %v1567_v36 = vld [vmem:[%s2027_s22 + $0x10] ss:$8 sps:$4 sm:$0xff]   ;;  %v1568_v37 = vld [vmem:[%s2027_s22 + $0x24] ss:$8 sps:$4 sm:$0xff]   ;;  %v1570_v38 = vld [vmem:[%s2027_s22 + $0x20] ss:$8 sps:$4 sm:$0xff]  }
  0x52   : > { %714 = vmatpush1.bf16.msra.mxu0 %v1564_v34  ;;  %v1571_v39 = vld [vmem:[%s2027_s22 + $0x34] ss:$8 sps:$4 sm:$0xff]   ;;  %v1573_v40 = vld [vmem:[%s2027_s22 + $0x30] ss:$8 sps:$4 sm:$0xff]   ;;  %v1574_v41 = vld [vmem:[%s2027_s22 + $0x44] ss:$8 sps:$4 sm:$0xff]  }
  0x53   : > { %715 = vmatprep.subr.bf16.mxu0 %v1565_v35  ;;  %v1576_v42 = vld [vmem:[%s2027_s22 + $0x40] ss:$8 sps:$4 sm:$0xff]   ;;  %v1577_v43 = vld [vmem:[%s2027_s22 + $0x54] ss:$8 sps:$4 sm:$0xff]   ;;  %v1579_v44 = vld [vmem:[%s2027_s22 + $0x50] ss:$8 sps:$4 sm:$0xff]  }
  0x54   : > { %v1580_v45 = vld [vmem:[%s2027_s22 + $0x64] ss:$8 sps:$4 sm:$0xff]   ;;  %v488_v47 = vld [vmem:[%s2016_s6 + $0x18] sm:$0xff]  ;;  %v1582_v49 = vld [vmem:[%s2027_s22 + $0x60] ss:$8 sps:$4 sm:$0xff]   ;;  %p1460_p7 = scmp.ne.s32.totalorder %s1784_s23, 1 }
  0x55   : > { %v486_v46 = vld [vmem:[%s2016_s6 + $0x8] sm:$0xff]  ;;  %v1583_v50 = vld [vmem:[%s2027_s22 + $0x74] ss:$8 sps:$4 sm:$0xff]   ;;  %v1585_v51 = vld [vmem:[%s2027_s22 + $0x70] ss:$8 sps:$4 sm:$0xff]  }
  0x56   : > { %716 = vmatpush1.bf16.msra.mxu0 %v1567_v36  ;;  %v502_v48 = vpack.c.bf16 %v488_v47, %v486_v46  ;;  %v1586_v52 = vld [vmem:[%s2027_s22 + $0x84] ss:$8 sps:$4 sm:$0xff]   ;;  %v1612_v54 = vld [vmem:[%s2025_s11] ss:$8 sps:$4 sm:$0xff]   ;;  %v1613_v55 = vld [vmem:[%s2025_s11 + $0x14] ss:$8 sps:$4 sm:$0xff]  }
  0x57   : > { %717 = vmatprep.subr.bf16.mxu0 %v1568_v37  ;;  %v1610_v53 = vld [vmem:[%s2025_s11 + $0x4] ss:$8 sps:$4 sm:$0xff]   ;;  %v1615_v56 = vld [vmem:[%s2025_s11 + $0x10] ss:$8 sps:$4 sm:$0xff]   ;;  %v1588_v57 = vld [vmem:[%s2027_s22 + $0x80] ss:$8 sps:$4 sm:$0xff]  }
  0x58   : > { %745 = vmatprep.mubr.bf16.mxu0 %v502_v48  ;;  %1082 = vmatprep.subr.bf16.mxu1 %v1610_v53  ;;  %v1616_v58 = vld [vmem:[%s2025_s11 + $0x24] ss:$8 sps:$4 sm:$0xff]   ;;  %v1589_v59 = vld [vmem:[%s2027_s22 + $0x94] ss:$8 sps:$4 sm:$0xff]   ;;  %v1618_v60 = vld [vmem:[%s2025_s11 + $0x20] ss:$8 sps:$4 sm:$0xff]  }
  0x59   : > { %1083 = vmatpush1.bf16.msra.mxu1 %v1612_v54  ;;  %v1591_v61 = vld [vmem:[%s2027_s22 + $0x90] ss:$8 sps:$4 sm:$0xff]   ;;  %v1619_v62 = vld [vmem:[%s2025_s11 + $0x34] ss:$8 sps:$4 sm:$0xff]   ;;  %v1592_v63 = vld [vmem:[%s2027_s22 + $0xa4] ss:$8 sps:$4 sm:$0xff]  }
  0x5a   : > { %718 = vmatpush1.bf16.msra.mxu0 %v1570_v38  ;;  %1084 = vmatprep.subr.bf16.mxu1 %v1613_v55  ;;  %v1594_v0 = vld [vmem:[%s2027_s22 + $0xa0] ss:$8 sps:$4 sm:$0xff]   ;;  %v1621_v1 = vld [vmem:[%s2025_s11 + $0x30] ss:$8 sps:$4 sm:$0xff]   ;;  %v1595_v2 = vld [vmem:[%s2027_s22 + $0xb4] ss:$8 sps:$4 sm:$0xff]  }
  0x5b   : > { %719 = vmatprep.subr.bf16.mxu0 %v1571_v39  ;;  %v1622_v3 = vld [vmem:[%s2025_s11 + $0x44] ss:$8 sps:$4 sm:$0xff]   ;;  %v1624_v4 = vld [vmem:[%s2025_s11 + $0x40] ss:$8 sps:$4 sm:$0xff]   ;;  %v1597_v5 = vld [vmem:[%s2027_s22 + $0xb0] ss:$8 sps:$4 sm:$0xff]  }
  0x5c   : > { %v1625_v6 = vld [vmem:[%s2025_s11 + $0x54] ss:$8 sps:$4 sm:$0xff]   ;;  %v1598_v7 = vld [vmem:[%s2027_s22 + $0xc4] ss:$8 sps:$4 sm:$0xff]   ;;  %v1627_v8 = vld [vmem:[%s2025_s11 + $0x50] ss:$8 sps:$4 sm:$0xff]  }
  0x5d   : > { %1085 = vmatpush1.bf16.msra.mxu1 %v1615_v56  ;;  %v1600_v9 = vld [vmem:[%s2027_s22 + $0xc0] ss:$8 sps:$4 sm:$0xff]   ;;  %v1628_v10 = vld [vmem:[%s2025_s11 + $0x64] ss:$8 sps:$4 sm:$0xff]   ;;  %v1601_v11 = vld [vmem:[%s2027_s22 + $0xd4] ss:$8 sps:$4 sm:$0xff]  }
  0x5e   : > { %720 = vmatpush1.bf16.msra.mxu0 %v1573_v40  ;;  %1086 = vmatprep.subr.bf16.mxu1 %v1616_v58  ;;  %v1630_v12 = vld [vmem:[%s2025_s11 + $0x60] ss:$8 sps:$4 sm:$0xff]   ;;  %v1603_v13 = vld [vmem:[%s2027_s22 + $0xd0] ss:$8 sps:$4 sm:$0xff]   ;;  %v1631_v14 = vld [vmem:[%s2025_s11 + $0x74] ss:$8 sps:$4 sm:$0xff]  }
  0x5f   : > { %721 = vmatprep.subr.bf16.mxu0 %v1574_v41  ;;  %v1604_v15 = vld [vmem:[%s2027_s22 + $0xe4] ss:$8 sps:$4 sm:$0xff]   ;;  %v1633_v16 = vld [vmem:[%s2025_s11 + $0x70] ss:$8 sps:$4 sm:$0xff]   ;;  %v1606_v17 = vld [vmem:[%s2027_s22 + $0xe0] ss:$8 sps:$4 sm:$0xff]  }
  0x60   : > { %v1634_v18 = vld [vmem:[%s2025_s11 + $0x84] ss:$8 sps:$4 sm:$0xff]   ;;  %v1607_v19 = vld [vmem:[%s2027_s22 + $0xf4] ss:$8 sps:$4 sm:$0xff]   ;;  %v1609_v20 = vld [vmem:[%s2027_s22 + $0xf0] ss:$8 sps:$4 sm:$0xff]  }
  0x61   : > { %1087 = vmatpush1.bf16.msra.mxu1 %v1618_v60  ;;  %v1636_v21 = vld [vmem:[%s2025_s11 + $0x80] ss:$8 sps:$4 sm:$0xff]   ;;  %v487_v23 = vld [vmem:[%s2016_s6 + $0x10] sm:$0xff]  ;;  %v492_v26 = vld [vmem:[%s2016_s6 + $0x38] sm:$0xff] }
  0x62   : > { %722 = vmatpush1.bf16.msra.mxu0 %v1576_v42  ;;  %1088 = vmatprep.subr.bf16.mxu1 %v1619_v62  ;;  %v485_v22 = vld [vmem:[%s2016_s6] sm:$0xff]  ;;  %v1637_v24 = vld [vmem:[%s2025_s11 + $0x94] ss:$8 sps:$4 sm:$0xff]   ;;  %v490_v25 = vld [vmem:[%s2016_s6 + $0x28] sm:$0xff] }
  0x63   : > { %723 = vmatprep.subr.bf16.mxu0 %v1577_v43  ;;  %v501_v27 = vpack.c.bf16 %v487_v23, %v485_v22  ;;  %v1639_v28 = vld [vmem:[%s2025_s11 + $0x90] ss:$8 sps:$4 sm:$0xff]   ;;  %v504_v29 = vpack.c.bf16 %v492_v26, %v490_v25  ;;  %v489_v30 = vld [vmem:[%s2016_s6 + $0x20] sm:$0xff]  ;;  %v494_v32 = vld [vmem:[%s2016_s6 + $0x48] sm:$0xff] }
  0x64   : > { %v491_v31 = vld [vmem:[%s2016_s6 + $0x30] sm:$0xff]  ;;  %v496_v33 = vld [vmem:[%s2016_s6 + $0x58] sm:$0xff]  ;;  %v493_v36 = vld [vmem:[%s2016_s6 + $0x40] sm:$0xff] }
  0x65   : > { %1089 = vmatpush1.bf16.msra.mxu1 %v1621_v1  ;;  %v503_v34 = vpack.c.bf16 %v491_v31, %v489_v30  ;;  %v506_v35 = vpack.c.bf16 %v496_v33, %v494_v32  ;;  %v495_v37 = vld [vmem:[%s2016_s6 + $0x50] sm:$0xff]  ;;  %v498_v38 = vld [vmem:[%s2016_s6 + $0x68] sm:$0xff]  ;;  %v500_v39 = vld [vmem:[%s2016_s6 + $0x78] sm:$0xff] }
  0x66   : > { %724 = vmatpush1.bf16.msra.mxu0 %v1579_v44  ;;  %1090 = vmatprep.subr.bf16.mxu1 %v1622_v3  ;;  %v505_v40 = vpack.c.bf16 %v495_v37, %v493_v36  ;;  %v508_v41 = vpack.c.bf16 %v500_v39, %v498_v38  ;;  %v497_v42 = vld [vmem:[%s2016_s6 + $0x60] sm:$0xff]  ;;  %v499_v43 = vld [vmem:[%s2016_s6 + $0x70] sm:$0xff] }
  0x67   : > { %725 = vmatprep.subr.bf16.mxu0 %v1580_v45  ;;  %v507_v44 = vpack.c.bf16 %v499_v43, %v497_v42  ;;  %v1640_v45 = vld [vmem:[%s2025_s11 + $0xa4] ss:$8 sps:$4 sm:$0xff]   ;;  %v1642_v46 = vld [vmem:[%s2025_s11 + $0xa0] ss:$8 sps:$4 sm:$0xff]   ;;  %v1643_v47 = vld [vmem:[%s2025_s11 + $0xb4] ss:$8 sps:$4 sm:$0xff]  }
  0x68   : > { %v1645_v48 = vld [vmem:[%s2025_s11 + $0xb0] ss:$8 sps:$4 sm:$0xff]   ;;  %v1652_v53 = vld [vmem:[%s2025_s11 + $0xe4] ss:$8 sps:$4 sm:$0xff]   ;;  %v1654_v54 = vld [vmem:[%s2025_s11 + $0xe0] ss:$8 sps:$4 sm:$0xff]  }
  0x69   : > { %1091 = vmatpush1.bf16.msra.mxu1 %v1624_v4  ;;  %v1655_v55 = vld [vmem:[%s2025_s11 + $0xf4] ss:$8 sps:$4 sm:$0xff]   ;;  %v1657_v56 = vld [vmem:[%s2025_s11 + $0xf0] ss:$8 sps:$4 sm:$0xff]   ;;  %v541_v60 = vld [vmem:[%s455_s12] sm:$0x3] }
  0x6a   : > { %726 = vmatpush1.bf16.msra.mxu0 %v1582_v49  ;;  %1092 = vmatprep.subr.bf16.mxu1 %v1625_v6  ;;  %v1646_v49 = vld [vmem:[%s2025_s11 + $0xc4] ss:$8 sps:$4 sm:$0xff]  }
  0x6b   : > { %727 = vmatprep.subr.bf16.mxu0 %v1583_v50  ;;  %v1648_v50 = vld [vmem:[%s2025_s11 + $0xc0] ss:$8 sps:$4 sm:$0xff]  }
  0x6d   : > { %1093 = vmatpush1.bf16.msra.mxu1 %v1627_v8 }
  0x6e   : > { %728 = vmatpush1.bf16.msra.mxu0 %v1585_v51  ;;  %1094 = vmatprep.subr.bf16.mxu1 %v1628_v10  ;;  %v1649_v51 = vld [vmem:[%s2025_s11 + $0xd4] ss:$8 sps:$4 sm:$0xff]  }
  0x6f   : > { %729 = vmatprep.subr.bf16.mxu0 %v1586_v52  ;;  %v1651_v52 = vld [vmem:[%s2025_s11 + $0xd0] ss:$8 sps:$4 sm:$0xff]  }
  0x71   : > { %1095 = vmatpush1.bf16.msra.mxu1 %v1630_v12 }
  0x72   : > { %730 = vmatpush1.bf16.msra.mxu0 %v1588_v57  ;;  %1096 = vmatprep.subr.bf16.mxu1 %v1631_v14  ;;  %v543_v57 = vlaneseq }
  0x73   : > { %731 = vmatprep.subr.bf16.mxu0 %v1589_v59 }
  0x74   : > { %v2112_v58 = vshrl.u32 %v543_v57, 7 }
  0x75   : > { %1097 = vmatpush1.bf16.msra.mxu1 %v1633_v16 }
  0x76   : > { %732 = vmatpush1.bf16.msra.mxu0 %v1591_v61  ;;  %1098 = vmatprep.subr.bf16.mxu1 %v1634_v18  ;;  %v545_v59 = vsub.s32 0, %v2112_v58  ;;  %v549_v61 = vsub.s32 1, %v2112_v58 }
  0x77   : > { %733 = vmatprep.subr.bf16.mxu0 %v1592_v63 }
  0x78   : > { %v2123_v62 = vrot.slane %v541_v60, %v545_v59  ;;  %v2127_v63 = vrot.slane %v541_v60, %v549_v61 }
  0x79   : > { %1099 = vmatpush1.bf16.msra.mxu1 %v1636_v21 }
  0x7a   : > { %734 = vmatpush1.bf16.msra.mxu0 %v1594_v0  ;;  %1100 = vmatprep.subr.bf16.mxu1 %v1637_v24 }
  0x7b   : > { %735 = vmatprep.subr.bf16.mxu0 %v1595_v2 }
  0x7d   : > { %1101 = vmatpush1.bf16.msra.mxu1 %v1639_v28 }
  0x7e   : > { %736 = vmatpush1.bf16.msra.mxu0 %v1597_v5  ;;  %1102 = vmatprep.subr.bf16.mxu1 %v1640_v45 }
  0x7f   : > { %737 = vmatprep.subr.bf16.mxu0 %v1598_v7 }
  0x81   : > { %1103 = vmatpush1.bf16.msra.mxu1 %v1642_v46 }
  0x82   : > { %738 = vmatpush1.bf16.msra.mxu0 %v1600_v9  ;;  %1104 = vmatprep.subr.bf16.mxu1 %v1643_v47 }
  0x83   : > { %739 = vmatprep.subr.bf16.mxu0 %v1601_v11 }
  0x85   : > { %1105 = vmatpush1.bf16.msra.mxu1 %v1645_v48 }
  0x86   : > { %740 = vmatpush1.bf16.msra.mxu0 %v1603_v13  ;;  %1106 = vmatprep.subr.bf16.mxu1 %v1646_v49 }
  0x87   : > { %741 = vmatprep.subr.bf16.mxu0 %v1604_v15 }
  0x89   : > { %1107 = vmatpush1.bf16.msra.mxu1 %v1648_v50 }
  0x8a   : > { %742 = vmatpush1.bf16.msra.mxu0 %v1606_v17  ;;  %1108 = vmatprep.subr.bf16.mxu1 %v1649_v51 }
  0x8b   : > { %743 = vmatprep.subr.bf16.mxu0 %v1607_v19 }
  0x8d   : > { %1109 = vmatpush1.bf16.msra.mxu1 %v1651_v52 }
  0x8e   : > { %744 = vmatpush1.bf16.msra.mxu0 %v1609_v20  ;;  %1110 = vmatprep.subr.bf16.mxu1 %v1652_v53 }
  0x91   : > { %746 = vmatmul.mubr.bf16.vlgmr.msra.gmra.mrb[0].mxu0 %v501_v27  ;;  %1111 = vmatpush1.bf16.msra.mxu1 %v1654_v54 }
  0x92   : > { %755 = vmatprep.mubr.bf16.mxu0 %v504_v29  ;;  %1112 = vmatprep.subr.bf16.mxu1 %v1655_v55 }
  0x95   : > { %1113 = vmatpush1.bf16.msra.mxu1 %v1657_v56 }
  0x99   : > { %756 = vmatmul.mubr.bf16.gmra.mrb[4].mxu0 %v503_v34 }
  0x9a   : > { %765 = vmatprep.mubr.bf16.mxu0 %v506_v35 }
  0xa1   : > { %766 = vmatmul.mubr.bf16.gmra.mrb[8].mxu0 %v505_v40 }
  0xa2   : > { %775 = vmatprep.mubr.bf16.mxu0 %v508_v41 }
  0xa9   : > { %776 = vmatmul.mubr.bf16.gmra.mrb[12].mxu0 %v507_v44 }
 0x164   : > { %v747_v0 = vpop.f32.mrb[0].mxu0 }
 0x165   : > { %v748_v1 = vadd.f32 %v747_v0, %v2123_v62  ;;  %v749_v2 = vpop.f32.mrb[1].mxu0 }
 0x166   : > { %v750_v3 = vadd.f32 %v749_v2, %v2127_v63  ;;  %v751_v4 = vpop.f32.mrb[2].mxu0 }
 0x167   : > { %v802_v5 = vmul.f32 0.70710677, %v748_v1  ;;  %v752_v6 = vadd.f32 %v751_v4, %v2123_v62  ;;  %v753_v7 = vpop.f32.mrb[3].mxu0  ;;  %v786_v28 = vmul.f32 0.5, %v748_v1 }
 0x168   : > { %v803_v8 = vmul.f32 0.70710677, %v750_v3  ;;  %v754_v9 = vadd.f32 %v753_v7, %v2127_v63  ;;  %v787_v38 = vmul.f32 0.5, %v750_v3 }
 0x169   : > { %1658 = verf.f32 %v802_v5  ;;  %v804_v10 = vmul.f32 0.70710677, %v752_v6  ;;  %v788_v33 = vmul.f32 0.5, %v752_v6 }
 0x16a   : > { %1660 = verf.f32 %v803_v8  ;;  %v805_v11 = vmul.f32 0.70710677, %v754_v9  ;;  %v789_v44 = vmul.f32 0.5, %v754_v9 }
 0x16b   : > { %1662 = verf.f32 %v804_v10 }
 0x16c   : > { %1664 = verf.f32 %v805_v11  ;;  %v757_v12 = vpop.f32.mrb[4].mxu0 }
 0x16d   : > { %v758_v13 = vadd.f32 %v757_v12, %v2123_v62  ;;  %v759_v14 = vpop.f32.mrb[5].mxu0 }
 0x16e   : > { %v760_v15 = vadd.f32 %v759_v14, %v2127_v63  ;;  %v761_v16 = vpop.f32.mrb[6].mxu0 }
 0x16f   : > { %v806_v17 = vmul.f32 0.70710677, %v758_v13  ;;  %v762_v18 = vadd.f32 %v761_v16, %v2123_v62  ;;  %v763_v19 = vpop.f32.mrb[7].mxu0  ;;  %v790_v4 = vmul.f32 0.5, %v758_v13 }
 0x170   : > { %v807_v20 = vmul.f32 0.70710677, %v760_v15  ;;  %v764_v21 = vadd.f32 %v763_v19, %v2127_v63  ;;  %v791_v9 = vmul.f32 0.5, %v760_v15 }
 0x171   : > { %1666 = verf.f32 %v806_v17  ;;  %v808_v22 = vmul.f32 0.70710677, %v762_v18  ;;  %v792_v5 = vmul.f32 0.5, %v762_v18 }
 0x172   : > { %1668 = verf.f32 %v807_v20  ;;  %v809_v23 = vmul.f32 0.70710677, %v764_v21  ;;  %v793_v10 = vmul.f32 0.5, %v764_v21 }
 0x173   : > { %v1659_v24 = vpop.eup %1658  ;;  %1670 = verf.f32 %v808_v22 }
 0x174   : > { %v1661_v25 = vpop.eup %1660  ;;  %1672 = verf.f32 %v809_v23  ;;  %v767_v26 = vpop.f32.mrb[8].mxu0  ;;  %v834_v29 = vadd.f32 1.0, %v1659_v24 }
 0x175   : > { %v1663_v27 = vpop.eup %1662  ;;  %v2138_v30 = vadd.f32 %v767_v26, %v2123_v62  ;;  %v769_v31 = vpop.f32.mrb[9].mxu0  ;;  %v835_v37 = vadd.f32 1.0, %v1661_v25 }
 0x176   : > { %v1665_v32 = vpop.eup %1664  ;;  %v836_v34 = vadd.f32 1.0, %v1663_v27  ;;  %v2141_v35 = vadd.f32 %v769_v31, %v2127_v63  ;;  %v771_v36 = vpop.f32.mrb[10].mxu0  ;;  %v850_v47 = vmul.f32 %v834_v29, %v786_v28 }
 0x177   : > { %v810_v39 = vmul.f32 0.70710677, %v2138_v30  ;;  %v772_v40 = vadd.f32 %v771_v36, %v2123_v62  ;;  %v773_v41 = vpop.f32.mrb[11].mxu0  ;;  %v837_v42 = vadd.f32 1.0, %v1665_v32  ;;  %v851_v50 = vmul.f32 %v835_v37, %v787_v38 }
 0x178   : > { %v852_v43 = vmul.f32 %v836_v34, %v788_v33  ;;  %v811_v45 = vmul.f32 0.70710677, %v2141_v35  ;;  %v774_v46 = vadd.f32 %v773_v41, %v2127_v63 }
 0x179   : > { %1674 = verf.f32 %v810_v39  ;;  %v812_v48 = vmul.f32 0.70710677, %v772_v40  ;;  %v853_v51 = vmul.f32 %v837_v42, %v789_v44  ;;  %v796_v32 = vmul.f32 0.5, %v772_v40 }
 0x17a   : > { %1676 = verf.f32 %v811_v45  ;;  %v813_v49 = vmul.f32 0.70710677, %v774_v46  ;;  %v882_v53 = vpack.c.bf16 %v852_v43, %v850_v47  ;;  %v797_v34 = vmul.f32 0.5, %v774_v46 }
 0x17b   : > { %v1667_v52 = vpop.eup %1666  ;;  %1678 = verf.f32 %v812_v48  ;;  %v883_v57 = vpack.c.bf16 %v853_v51, %v851_v50 }
 0x17c   : > { %v1669_v54 = vpop.eup %1668  ;;  %v838_v55 = vadd.f32 1.0, %v1667_v52  ;;  %1680 = verf.f32 %v813_v49  ;;  %v777_v56 = vpop.f32.mrb[12].mxu0 }
 0x17d   : > { %v1671_v60 = vpop.eup %1670  ;;  %v839_v0 = vadd.f32 1.0, %v1669_v54  ;;  %v778_v1 = vadd.f32 %v777_v56, %v2123_v62  ;;  %v779_v2 = vpop.f32.mrb[13].mxu0  ;;  %1114 = vmatprep.mubr.bf16.mxu1 %v883_v57 }
 0x17e   : > { %v1673_v3 = vpop.eup %1672  ;;  %v840_v6 = vadd.f32 1.0, %v1671_v60  ;;  %v780_v7 = vadd.f32 %v779_v2, %v2127_v63  ;;  %v781_v8 = vpop.f32.mrb[14].mxu0  ;;  %1115 = vmatmul.mubr.bf16.vlgmr.msra.gmra.mrb[0].mxu1 %v882_v53  ;;  %v854_v16 = vmul.f32 %v838_v55, %v790_v4  ;;  %v867_v2 = vld [vmem:[#allocation2 + $0x8] sm:$0xff]  ;;  %v868_v4 = vld [vmem:[#allocation2 + $0x10] sm:$0xff] }
 0x17f   : > { %v841_v11 = vadd.f32 1.0, %v1673_v3  ;;  %v814_v12 = vmul.f32 0.70710677, %v778_v1  ;;  %v783_v14 = vpop.f32.mrb[15].mxu0  ;;  %v782_v20 = vadd.f32 %v781_v8, %v2123_v62  ;;  %v855_v22 = vmul.f32 %v839_v0, %v791_v9  ;;  %v866_v0 = vld [vmem:[#allocation2] sm:$0xff] }
 0x180   : > { %v856_v17 = vmul.f32 %v840_v6, %v792_v5  ;;  %v815_v19 = vmul.f32 0.70710677, %v780_v7  ;;  %v784_v13 = vadd.f32 %v783_v14, %v2127_v63  ;;  %v794_v62 = vmul.f32 0.5, %v2138_v30  ;;  %v869_v6 = vld [vmem:[#allocation2 + $0x18] sm:$0xff]  ;;  %v871_v14 = vld [vmem:[#allocation2 + $0x28] sm:$0xff] }
 0x181   : > { %v857_v23 = vmul.f32 %v841_v11, %v793_v10  ;;  %1682 = verf.f32 %v814_v12  ;;  %v816_v18 = vmul.f32 0.70710677, %v782_v20  ;;  %v795_v63 = vmul.f32 0.5, %v2141_v35  ;;  %v870_v12 = vld [vmem:[#allocation2 + $0x20] sm:$0xff] }
 0x182   : > { %1684 = verf.f32 %v815_v19  ;;  %v884_v24 = vpack.c.bf16 %v856_v17, %v854_v16  ;;  %v817_v15 = vmul.f32 0.70710677, %v784_v13  ;;  %v798_v40 = vmul.f32 0.5, %v778_v1  ;;  %v872_v17 = vld [vmem:[#allocation2 + $0x30] sm:$0xff] }
 0x183   : > { %v1675_v25 = vpop.eup %1674  ;;  %v885_v21 = vpack.c.bf16 %v857_v23, %v855_v22  ;;  %1686 = verf.f32 %v816_v18  ;;  %v800_v50 = vmul.f32 0.5, %v782_v20  ;;  %v799_v35 = vmul.f32 0.5, %v780_v7  ;;  %v873_v22 = vld [vmem:[#allocation2 + $0x38] sm:$0xff] }
 0x184   : > { %v1677_v26 = vpop.eup %1676  ;;  %v842_v27 = vadd.f32 1.0, %v1675_v25  ;;  %1688 = verf.f32 %v817_v15  ;;  %v801_v46 = vmul.f32 0.5, %v784_v13  ;;  %v874_v15 = vld [vmem:[#allocation2 + $0x40] sm:$0xff] }
 0x185   : > { %v1679_v28 = vpop.eup %1678  ;;  %v843_v29 = vadd.f32 1.0, %v1677_v26  ;;  %1124 = vmatprep.mubr.bf16.mxu1 %v885_v21  ;;  %v875_v21 = vld [vmem:[#allocation2 + $0x48] sm:$0xff] }
 0x186   : > { %v1681_v31 = vpop.eup %1680  ;;  %v844_v33 = vadd.f32 1.0, %v1679_v28  ;;  %1125 = vmatmul.mubr.bf16.gmra.mrb[4].mxu1 %v884_v24  ;;  %v858_v37 = vmul.f32 %v842_v27, %v794_v62  ;;  %v876_v27 = vld [vmem:[#allocation2 + $0x50] sm:$0xff] }
 0x187   : > { %v845_v36 = vadd.f32 1.0, %v1681_v31  ;;  %v859_v39 = vmul.f32 %v843_v29, %v795_v63  ;;  %v877_v31 = vld [vmem:[#allocation2 + $0x58] sm:$0xff] }
 0x188   : > { %v860_v38 = vmul.f32 %v844_v33, %v796_v32 }
 0x189   : > { %v861_v41 = vmul.f32 %v845_v36, %v797_v34  ;;  %v878_v36 = vld [vmem:[#allocation2 + $0x60] sm:$0xff] }
 0x18a   : > { %v886_v42 = vpack.c.bf16 %v860_v38, %v858_v37  ;;  %v879_v37 = vld [vmem:[#allocation2 + $0x68] sm:$0xff] }
 0x18b   : > { %v1683_v43 = vpop.eup %1682  ;;  %v887_v44 = vpack.c.bf16 %v861_v41, %v859_v39  ;;  %v880_v39 = vld [vmem:[#allocation2 + $0x70] sm:$0xff] }
 0x18c   : > { %v1685_v45 = vpop.eup %1684  ;;  %v846_v47 = vadd.f32 1.0, %v1683_v43  ;;  %v881_v43 = vld [vmem:[#allocation2 + $0x78] sm:$0xff] }
 0x18d   : > { %1134 = vmatprep.mubr.bf16.mxu1 %v887_v44  ;;  %v1687_v48 = vpop.eup %1686  ;;  %v847_v49 = vadd.f32 1.0, %v1685_v45 }
 0x18e   : > { %v1689_v30 = vpop.eup %1688  ;;  %v848_v51 = vadd.f32 1.0, %v1687_v48  ;;  %1135 = vmatmul.mubr.bf16.gmra.mrb[8].mxu1 %v886_v42  ;;  %v862_v53 = vmul.f32 %v846_v47, %v798_v40  ;;  %v1207_v40 = vld [vmem:[%s2250_s4] sm:$0x3] (!%p1460_p7) }
 0x18f   : > { %v849_v52 = vadd.f32 1.0, %v1689_v30  ;;  %v863_v55 = vmul.f32 %v847_v49, %v799_v35  ;;  %v1216_v35 = vrot.slane (!%p1460_p7), %v1207_v40, %v549_v61 }
 0x190   : > { %v864_v54 = vmul.f32 %v848_v51, %v800_v50  ;;  %v1212_v51 = vrot.slane (!%p1460_p7), %v1207_v40, %v545_v59 }
 0x191   : > { %v865_v56 = vmul.f32 %v849_v52, %v801_v46 }
 0x192   : > { %v888_v57 = vpack.c.bf16 %v864_v54, %v862_v53 }
 0x193   : > { %v889_v60 = vpack.c.bf16 %v865_v56, %v863_v55 }
 0x195   : > { %1144 = vmatprep.mubr.bf16.mxu1 %v889_v60 }
 0x196   : > { %1145 = vmatmul.mubr.bf16.gmra.mrb[12].mxu1 %v888_v57 }
 0x251   : > { %v1116_v3 = vpop.f32.mrb[0].mxu1 }
 0x252   : > { %v1155_v5 = vadd.f32 %v1116_v3, %v866_v0  ;;  %v1118_v1 = vpop.f32.mrb[1].mxu1 }
 0x253   : > { %v1156_v8 = vadd.f32 %v1118_v1, %v867_v2  ;;  %v1120_v9 = vpop.f32.mrb[2].mxu1 }
 0x254   : > { %1171 = vst [vmem:[#allocation2] sm:$0xff] %v1155_v5  ;;  %v1157_v7 = vadd.f32 %v1120_v9, %v868_v4  ;;  %v1122_v10 = vpop.f32.mrb[3].mxu1 }
 0x255   : > { %1172 = vst [vmem:[#allocation2 + $0x8] sm:$0xff] %v1156_v8  ;;  %v1158_v11 = vadd.f32 %v1122_v10, %v869_v6 }
 0x256   : > { %1173 = vst [vmem:[#allocation2 + $0x10] sm:$0xff] %v1157_v7 }
 0x257   : > { %1174 = vst [vmem:[#allocation2 + $0x18] sm:$0xff] %v1158_v11 }
 0x259   : > { %v1126_v16 = vpop.f32.mrb[4].mxu1 }
 0x25a   : > { %v1159_v19 = vadd.f32 %v1126_v16, %v870_v12  ;;  %v1128_v20 = vpop.f32.mrb[5].mxu1 }
 0x25b   : > { %v1160_v23 = vadd.f32 %v1128_v20, %v871_v14  ;;  %v1130_v13 = vpop.f32.mrb[6].mxu1  ;;  %v1191_v30 = vld [vmem:[#allocation2] sm:$0xff] (!%p1460_p7) }
 0x25c   : > { %1175 = vst [vmem:[#allocation2 + $0x20] sm:$0xff] %v1159_v19  ;;  %v1161_v18 = vadd.f32 %v1130_v13, %v872_v17  ;;  %v1132_v24 = vpop.f32.mrb[7].mxu1  ;;  %v1192_v50 = vld [vmem:[#allocation2 + $0x8] sm:$0xff] (!%p1460_p7)  ;;  %v1219_v57 = vadd.f32 (!%p1460_p7), %v1212_v51, %v1191_v30 }
 0x25d   : > { %1176 = vst [vmem:[#allocation2 + $0x28] sm:$0xff] %v1160_v23  ;;  %v1162_v25 = vadd.f32 %v1132_v24, %v873_v22  ;;  %v1193_v46 = vld [vmem:[#allocation2 + $0x10] sm:$0xff] (!%p1460_p7)  ;;  %v1220_v60 = vadd.f32 (!%p1460_p7), %v1216_v35, %v1192_v50 }
 0x25e   : > { %1177 = vst [vmem:[#allocation2 + $0x30] sm:$0xff] %v1161_v18  ;;  %v1194_v52 = vld [vmem:[#allocation2 + $0x18] sm:$0xff] (!%p1460_p7)  ;;  %v1221_v0 = vadd.f32 (!%p1460_p7), %v1212_v51, %v1193_v46  ;;  %1235 = vst [vmem:[%s2029_s28] sm:$0xff] (!%p1460_p7), %v1219_v57 }
 0x25f   : > { %1178 = vst [vmem:[#allocation2 + $0x38] sm:$0xff] %v1162_v25  ;;  %v1222_v2 = vadd.f32 (!%p1460_p7), %v1216_v35, %v1194_v52  ;;  %1236 = vst [vmem:[%s2029_s28 + $0x8] sm:$0xff] (!%p1460_p7), %v1220_v60 }
 0x260   : > { %1237 = vst [vmem:[%s2029_s28 + $0x10] sm:$0xff] (!%p1460_p7), %v1221_v0 }
 0x261   : > { %v1136_v26 = vpop.f32.mrb[8].mxu1  ;;  %1238 = vst [vmem:[%s2029_s28 + $0x18] sm:$0xff] (!%p1460_p7), %v1222_v2 }
 0x262   : > { %v1163_v28 = vadd.f32 %v1136_v26, %v874_v15  ;;  %v1138_v29 = vpop.f32.mrb[9].mxu1 }
 0x263   : > { %v1164_v62 = vadd.f32 %v1138_v29, %v875_v21  ;;  %v1140_v32 = vpop.f32.mrb[10].mxu1  ;;  %v1195_v53 = vld [vmem:[#allocation2 + $0x20] sm:$0xff] (!%p1460_p7) }
 0x264   : > { %1179 = vst [vmem:[#allocation2 + $0x40] sm:$0xff] %v1163_v28  ;;  %v1165_v33 = vadd.f32 %v1140_v32, %v876_v27  ;;  %v1142_v63 = vpop.f32.mrb[11].mxu1  ;;  %v1196_v54 = vld [vmem:[#allocation2 + $0x28] sm:$0xff] (!%p1460_p7)  ;;  %v1223_v5 = vadd.f32 (!%p1460_p7), %v1212_v51, %v1195_v53 }
 0x265   : > { %1180 = vst [vmem:[#allocation2 + $0x48] sm:$0xff] %v1164_v62  ;;  %v1166_v34 = vadd.f32 %v1142_v63, %v877_v31  ;;  %v1197_v55 = vld [vmem:[#allocation2 + $0x30] sm:$0xff] (!%p1460_p7)  ;;  %v1224_v58 = vadd.f32 (!%p1460_p7), %v1216_v35, %v1196_v54 }
 0x266   : > { %1181 = vst [vmem:[#allocation2 + $0x50] sm:$0xff] %v1165_v33  ;;  %v1198_v56 = vld [vmem:[#allocation2 + $0x38] sm:$0xff] (!%p1460_p7)  ;;  %v1225_v61 = vadd.f32 (!%p1460_p7), %v1212_v51, %v1197_v55  ;;  %1239 = vst [vmem:[%s2029_s28 + $0x20] sm:$0xff] (!%p1460_p7), %v1223_v5 }
 0x267   : > { %1182 = vst [vmem:[#allocation2 + $0x58] sm:$0xff] %v1166_v34  ;;  %v1226_v1 = vadd.f32 (!%p1460_p7), %v1216_v35, %v1198_v56  ;;  %1240 = vst [vmem:[%s2029_s28 + $0x28] sm:$0xff] (!%p1460_p7), %v1224_v58 }
 0x268   : > { %1241 = vst [vmem:[%s2029_s28 + $0x30] sm:$0xff] (!%p1460_p7), %v1225_v61 }
 0x269   : > { %v1146_v38 = vpop.f32.mrb[12].mxu1  ;;  %1190 = sbr.rel (%p1460_p7) target bundleno = 634 (0x27a), region = 86  ;;  %1242 = vst [vmem:[%s2029_s28 + $0x38] sm:$0xff] (!%p1460_p7), %v1226_v1 }
 0x26a   : > { %v1167_v41 = vadd.f32 %v1146_v38, %v878_v36  ;;  %v1148_v42 = vpop.f32.mrb[13].mxu1 }
 0x26b   : > { %v1168_v44 = vadd.f32 %v1148_v42, %v879_v37  ;;  %v1150_v45 = vpop.f32.mrb[14].mxu1  ;;  %v1199_v3 = vld [vmem:[#allocation2 + $0x40] sm:$0xff] (!%p1460_p7) }
 0x26c   : > { %1183 = vst [vmem:[#allocation2 + $0x60] sm:$0xff] %v1167_v41  ;;  %v1169_v47 = vadd.f32 %v1150_v45, %v880_v39  ;;  %v1152_v48 = vpop.f32.mrb[15].mxu1  ;;  %v1200_v4 = vld [vmem:[#allocation2 + $0x48] sm:$0xff] (!%p1460_p7)  ;;  %v1227_v7 = vadd.f32 (!%p1460_p7), %v1212_v51, %v1199_v3 }
 0x26d   : > { %1184 = vst [vmem:[#allocation2 + $0x68] sm:$0xff] %v1168_v44  ;;  %v1170_v49 = vadd.f32 %v1152_v48, %v881_v43  ;;  %v1201_v59 = vld [vmem:[#allocation2 + $0x50] sm:$0xff] (!%p1460_p7)  ;;  %v1228_v10 = vadd.f32 (!%p1460_p7), %v1216_v35, %v1200_v4 }
 0x26e   : > { %1185 = vst [vmem:[#allocation2 + $0x70] sm:$0xff] %v1169_v47  ;;  %v1202_v6 = vld [vmem:[#allocation2 + $0x58] sm:$0xff] (!%p1460_p7)  ;;  %v1229_v11 = vadd.f32 (!%p1460_p7), %v1212_v51, %v1201_v59  ;;  %1243 = vst [vmem:[%s2029_s28 + $0x40] sm:$0xff] (!%p1460_p7), %v1227_v7 }
 0x26f   : > { %1186 = vst [vmem:[#allocation2 + $0x78] sm:$0xff] %v1170_v49  ;;  %v1230_v12 = vadd.f32 (!%p1460_p7), %v1216_v35, %v1202_v6  ;;  %1244 = vst [vmem:[%s2029_s28 + $0x48] sm:$0xff] (!%p1460_p7), %v1228_v10 }
 0x270   : > { %1245 = vst [vmem:[%s2029_s28 + $0x50] sm:$0xff] %v1229_v11 }
 0x271   : > { %1246 = vst [vmem:[%s2029_s28 + $0x58] sm:$0xff] %v1230_v12 }
 0x273   : > { %v1203_v8 = vld [vmem:[#allocation2 + $0x60] sm:$0xff] }
 0x274   : > { %v1204_v9 = vld [vmem:[#allocation2 + $0x68] sm:$0xff]  ;;  %v1231_v17 = vadd.f32 %v1212_v51, %v1203_v8 }
 0x275   : > { %v1205_v14 = vld [vmem:[#allocation2 + $0x70] sm:$0xff]  ;;  %v1232_v19 = vadd.f32 %v1216_v35, %v1204_v9 }
 0x276   : > { %v1206_v16 = vld [vmem:[#allocation2 + $0x78] sm:$0xff]  ;;  %v1233_v20 = vadd.f32 %v1212_v51, %v1205_v14  ;;  %1247 = vst [vmem:[%s2029_s28 + $0x60] sm:$0xff] %v1231_v17 }
 0x277   : > { %v1234_v22 = vadd.f32 %v1216_v35, %v1206_v16  ;;  %1248 = vst [vmem:[%s2029_s28 + $0x68] sm:$0xff] %v1232_v19 }
 0x278   : > { %1249 = vst [vmem:[%s2029_s28 + $0x70] sm:$0xff] %v1233_v20 }
 0x279   : > { %1250 = vst [vmem:[%s2029_s28 + $0x78] sm:$0xff] %v1234_v22 }
 0x27a PF: > { %s1471_s23 = sshll.u32 %s1788_s24, 11  ;;  %s1266_s12 = sshll.u32 %s2029_s28, 4  ;;  %s2184_s12 = int_to_ptr.vmem [resolvable:$true] %s1266_s12 }
 0x27b   : > { %s2181_s11 = scalar_lea.hbm %s2251_s5, %s1471_s23  ;;  %s2269_s16 = sand.u32 1, %s1768_s19  }
 0x27c   : > { %s2188_s17 = scalar_lea.sflag [#allocation5], %s2269_s16  ;;  %s1690_s7 = scalar_lea.vmem %s2184_s12, 2048 }
 0x27d   : > { %p1691_p8 = scmp.ne.s32.totalorder %s2184_s12, %s1690_s7  ;;  %s1803_s24 = smov [#allocation4]  }
 0x27e   : > { %s1694_s8 = sshll.u32 %s1803_s24, 4  ;;  %s1695_s8 = int_to_ptr.vmem [resolvable:$false] %s1694_s8 }
 0x27f   : > { %p1692_p9 = pnand %p1691_p8, %p1915_p10  ;;  %s1696_s29 = scalar_lea.vmem %s1695_s8, 4096 }
 0x280   : > { %p1697_p13 = scmp.lt.s32.totalorder %s2184_s12, %s1695_s8  ;;  %p1698_p0 = scmp.lt.s32.totalorder %s1696_s29, %s1690_s7 }
 0x281   : > { %p1693_p11 = pneg %p1692_p9 }
 0x282   : > { %p1699_p1 = por %p1698_p0, %p1697_p13 }
 0x284   : > { %p1700_p2 = pnand %p1699_p1, %p1693_p11 }
 0x286   : > { %1703 = shalt.err (!%p1700_p2)
}
 0x287   : > { %s1704_s9 = scalar_lea.hbm %s2181_s11, 2048  ;;  %s1708_s28 = scalar_lea.hbm %s2251_s5, 4096 }
 0x288   : > { %p1705_p3 = scmp.ne.s32.totalorder %s2181_s11, %s1704_s9  ;;  %p1709_p6 = scmp.lt.u32.totalorder %s2181_s11, %s2251_s5 }
 0x289   : > { %p1710_p7 = scmp.lt.u32.totalorder %s1708_s28, %s1704_s9  ;;  %p1712_p9 = scmp.lt.u32.totalorder %s1704_s9, %s2181_s11 }
 0x28a   : > { %p1706_p4 = pnand %p1705_p3, %p1915_p10 }
 0x28b   : > { %p1711_p8 = por %p1710_p7, %p1709_p6 }
 0x28c   : > { %p1707_p5 = pneg %p1706_p4 }
 0x28d   : > { %p1713_p11 = por %p1712_p9, %p1711_p8 }
 0x28f   : > { %p1714_p13 = pnand %p1713_p11, %p1707_p5 }
 0x291   : > { %1717 = shalt.err (!%p1714_p13)
}
 0x292   : > { %s1804_s25 = smov 256   ;;  %s1805_s26 = smov 16  }
 0x293   : > { %1472 = dma.vmem_to_hbm [thread:$0]  (%p1915_p10), %s2184_s12, 2048, %s2181_s11, %s2188_s17, %s1804_s25, %s1804_s25, %s1805_s26  }
 0x294 PF: > { %p1478_p0 = scmp.ge.s32.totalorder %s1800_s27, 2  ;;  %s1281_s23 = sand.u32 1, %s1764_s18  }
 0x295   : > { %s1282_s30 = scalar_lea.sflag [#allocation5], %s1281_s23 }
 0x296   : > { %p1475_p1 = pnand %p1478_p0, %p1922_p12 }
 0x298   : > { %1759 = dma.done.wait (!%p1475_p1), %s1282_s30, 2048  }
 0x299   : > { %1761 = vsyncadd (!%p1475_p1), %s1282_s30, 4294965248  ;;  %s18_s27 = sadd.s32 1, %s1800_s27   ;;  %s2270_s21 = sld [smem:[#allocation7_spill]] }
 0x29a   : > { %p15_p2 = scmp.ge.s32.totalorder %s18_s27, 6   ;;  %s2271_s22 = sld [smem:[#allocation12_spill]] }
 0x29b   : > { %s2272_s23 = sld [smem:[#allocation8_spill]]  ;;  %s2273_s24 = sld [smem:[#allocation9_spill]] }
 0x29c   : > { %s2274_s25 = sld [smem:[#allocation10_spill]]  ;;  %s2275_s26 = sld [smem:[#allocation11_spill]] }
 0x29d   : > { %s2276_s18 = smov %s1768_s19  ;;  %s2277_s19 = smov %s1772_s20 }
 0x29e   : > { %s2278_s20 = smov %s1920_s14  ;;  %17 = sbr.rel (!%p15_p2) target bundleno = 8 (0x8), region = 135 }
 0x2a5   :  { %1287 = vsyncpa [#allocation5], 1 }
 0x2a6   :  { %1289 = vsyncpa [#allocation5 + $0x1], 1 }

</bundles_post_ra>
